<compile_context>
chip_gen: v5e
topology: v5e:2x2
jax: 0.10.0
libtpu: 0.0.40
codegen_flags: <defaults>
</compile_context>

<pallas_src>
import math
import jax
import jax.numpy as jnp
from jax.experimental import pallas as pl
from jax.experimental.pallas import tpu as pltpu


def _round_up(x, m):
    return ((x + m - 1) // m) * m


def _gnnc_kernel(x_ref, adj_ref, w_ref, b_ref, out_ref):
    # x_ref  : (bb, N, Fp)     compute dtype (bf16 or f32)
    # adj_ref: (bb, N, N)      compute dtype
    # w_ref  : (L, bb, Fp, Fp) compute dtype (zero padded)
    # b_ref  : (L, bb, 1, Fp)  f32           (zero padded)
    # out_ref: (bb, N, Fp)     f32           (lane-dense: Fp % 128 == 0)
    cdtype = x_ref.dtype
    h = x_ref[...]
    adj = adj_ref[...]
    n_layers = w_ref.shape[0]
    for k in range(n_layers):
        # support = h @ W_k         (batched MXU matmul, f32 accumulate)
        support = jnp.einsum('bnf,bfo->bno', h, w_ref[k],
                             preferred_element_type=jnp.float32)
        # out = adj @ support + b_k (batched MXU matmul; bias add in f32)
        out = jnp.einsum('bnm,bmo->bno', adj, support.astype(cdtype),
                         preferred_element_type=jnp.float32)
        out = out + b_ref[k]                      # (bb,1,Fp) broadcasts over N
        if k < n_layers - 1:
            # relu (+ inference-mode dropout = identity); back to MXU dtype
            h = jnp.maximum(out, 0.0).astype(cdtype)
        else:
            out_ref[...] = out.astype(out_ref.dtype)


def gnnc_forward(x, adj, params, *, compute_dtype=jnp.bfloat16, batch_block=None):
    """params = [(W1, b1), ..., (WL, bL)]; Wk: (B, Fin_k, Fout_k), bk: (B, Fout_k)."""
    B, N, nfeat = x.shape
    L = len(params)
    f_out_last = params[-1][0].shape[2]

    # Common padded feature width (multiple of 128 -> lane-dense output stores).
    feat_dims = [nfeat] + [w.shape[2] for (w, _) in params]
    fp = _round_up(max(feat_dims), 128)

    # Zero-pad and stack all layer parameters -> one weight DMA and one bias DMA
    # per grid step (zero padding is exact: padded rows/cols contribute 0).
    w_stack = jnp.stack(
        [jnp.pad(w, ((0, 0), (0, fp - w.shape[1]), (0, fp - w.shape[2])))
         for (w, _) in params]).astype(compute_dtype)           # (L, B, Fp, Fp)
    b_stack = jnp.stack(
        [jnp.pad(b, ((0, 0), (0, fp - b.shape[1])))[:, None, :]
         for (_, b) in params]).astype(jnp.float32)             # (L, B, 1, Fp)

    x_p = jnp.pad(x, ((0, 0), (0, 0), (0, fp - nfeat))).astype(compute_dtype)
    adj_c = adj.astype(compute_dtype)

    if batch_block is None:
        # >=2 grid steps when B permits (both v7x TensorCores get work) while
        # the remaining batch elements are batched inside each step.
        batch_block = -(-B // 2) if B > 1 else 1
    bb = min(batch_block, B)
    num_steps = pl.cdiv(B, bb)

    grid_spec = pltpu.PrefetchScalarGridSpec(
        num_scalar_prefetch=0,
        grid=(num_steps,),
        in_specs=[
            pl.BlockSpec((bb, N, fp), lambda i: (i, 0, 0)),       # x
            pl.BlockSpec((bb, N, N), lambda i: (i, 0, 0)),        # adj
            pl.BlockSpec((L, bb, fp, fp), lambda i: (0, i, 0, 0)),  # stacked W
            pl.BlockSpec((L, bb, 1, fp), lambda i: (0, i, 0, 0)),   # stacked b
        ],
        out_specs=pl.BlockSpec((bb, N, fp), lambda i: (i, 0, 0)),
    )

    # Advisory cost estimate (logical, unpadded FLOPs) for the XLA scheduler.
    flops = 0
    for (w, _) in params:
        fin, fout = w.shape[1], w.shape[2]
        flops += 2 * B * (N * fin * fout + N * N * fout)
    itemsize_c = jnp.dtype(compute_dtype).itemsize
    bytes_accessed = (x_p.size * itemsize_c + adj_c.size * itemsize_c
                      + w_stack.size * itemsize_c + b_stack.size * 4
                      + B * N * fp * 4)

    fn = pl.pallas_call(
        _gnnc_kernel,
        out_shape=jax.ShapeDtypeStruct((B, N, fp), jnp.float32),
        grid_spec=grid_spec,
        compiler_params=pltpu.CompilerParams(
            dimension_semantics=("parallel",)),
        cost_estimate=pl.CostEstimate(
            flops=flops, transcendentals=0, bytes_accessed=bytes_accessed),
    )
    out_padded = fn(x_p, adj_c, w_stack, b_stack)
    return out_padded[..., :f_out_last]


def init_graph_conv_params(key, batch_size, in_features, out_features):
    """Mirror GraphConvolution.reset_parameters: uniform(-stdv, stdv),
       stdv = 1/sqrt(out_features)."""
    stdv = 1.0 / math.sqrt(out_features)
    kw, kb = jax.random.split(key)
    w = jax.random.uniform(kw, (batch_size, in_features, out_features),
                           minval=-stdv, maxval=stdv, dtype=jnp.float32)
    b = jax.random.uniform(kb, (batch_size, out_features),
                           minval=-stdv, maxval=stdv, dtype=jnp.float32)
    return w, b


def reference_forward(x, adj, params, compute_dtype=jnp.float32):
    """Pure-JAX reference (inference mode: dropout = identity). Mirrors the
    kernel's matmul dtype so bf16 runs can be checked with a tight tolerance."""
    cd = compute_dtype
    h = x.astype(cd)
    adj_c = adj.astype(cd)
    L = len(params)
    out = None
    for k, (w, b) in enumerate(params):
        support = jnp.einsum('bnf,bfo->bno', h, w.astype(cd),
                             preferred_element_type=jnp.float32)
        out = jnp.einsum('bnm,bmo->bno', adj_c, support.astype(cd),
                         preferred_element_type=jnp.float32) + b[:, None, :]
        if k < L - 1:
            h = jnp.maximum(out, 0.0).astype(cd)
    return out


if __name__ == "__main__":
    # Small shapes consistent with the module's forward:
    B, N = 2, 16
    nfeat, nhid1, nhid2, nhid3, nhid4 = 32, 32, 24, 16, 8
    dropout = 0.5  # identity in inference mode

    key = jax.random.PRNGKey(0)
    kx, kadj, k1, k2, k3, k4 = jax.random.split(key, 6)

    x = jax.random.normal(kx, (B, N, nfeat), dtype=jnp.float32)
    adj_raw = jax.random.uniform(kadj, (B, N, N), dtype=jnp.float32)
    adj = adj_raw / jnp.sum(adj_raw, axis=-1, keepdims=True)  # row-normalized adjacency

    params = [
        init_graph_conv_params(k1, B, nfeat, nhid1),
        init_graph_conv_params(k2, B, nhid1, nhid2),
        init_graph_conv_params(k3, B, nhid2, nhid3),
        init_graph_conv_params(k4, B, nhid3, nhid4),
    ]

    compute_dtype = jnp.bfloat16   # MXU input dtype; accumulation stays f32

    out = gnnc_forward(x, adj, params, compute_dtype=compute_dtype)
    out = jax.block_until_ready(out)

    assert out.shape == (B, N, nhid4)
    assert not bool(jnp.any(jnp.isnan(out))), "NaNs in kernel output"

    # Check vs. a reference that mirrors the bf16 matmul dtype (tight tolerance)...
    ref = reference_forward(x, adj, params, compute_dtype=compute_dtype)
    assert jnp.allclose(out, ref, atol=1e-2, rtol=1e-2), "mismatch vs bf16-mirrored reference"
    # ...and vs. the pure-f32 reference (looser tolerance, covers bf16 rounding).
    ref_f32 = reference_forward(x, adj, params, compute_dtype=jnp.float32)
    assert jnp.allclose(out, ref_f32, atol=5e-2, rtol=5e-2), "mismatch vs f32 reference"

    print("KERNEL_OK")
</pallas_src>

<mosaic_0001>
module attributes {stable_mosaic.version = 11 : i64} {
  func.func @_gnnc_kernel(%arg0: i32, %arg1: memref<1x16x128xbf16, #tpu.memory_space<vmem>>, %arg2: memref<1x16x16xbf16, #tpu.memory_space<vmem>>, %arg3: memref<4x1x128x128xbf16, #tpu.memory_space<vmem>>, %arg4: memref<4x1x1x128xf32, #tpu.memory_space<vmem>>, %arg5: memref<1x16x128xf32, #tpu.memory_space<vmem>>) attributes {dimension_semantics = [#tpu.dimension_semantics<parallel>], iteration_bounds = array<i64: 2>, scalar_prefetch = 0 : i64, scratch_operands = 0 : i64, tpu.core_type = #tpu.core_type<tc>, window_params = [{transform_indices = @transform_0, window_bounds = array<i64: 1, 16, 128>}, {transform_indices = @transform_1, window_bounds = array<i64: 1, 16, 16>}, {transform_indices = @transform_2, window_bounds = array<i64: 4, 1, 128, 128>}, {transform_indices = @transform_3, window_bounds = array<i64: 4, 1, 1, 128>}, {transform_indices = @transform_4, window_bounds = array<i64: 1, 16, 128>}]} {
    %c0 = arith.constant 0 : index
    %c0_0 = arith.constant 0 : index
    %c0_1 = arith.constant 0 : index
    %0 = vector.load %arg1[%c0, %c0_0, %c0_1] : memref<1x16x128xbf16, #tpu.memory_space<vmem>>, vector<1x16x128xbf16>
    %c0_2 = arith.constant 0 : index
    %c0_3 = arith.constant 0 : index
    %c0_4 = arith.constant 0 : index
    %1 = vector.load %arg2[%c0_2, %c0_3, %c0_4] : memref<1x16x16xbf16, #tpu.memory_space<vmem>>, vector<1x16x16xbf16>
    %c0_5 = arith.constant 0 : index
    %c0_6 = arith.constant 0 : index
    %c0_7 = arith.constant 0 : index
    %c0_8 = arith.constant 0 : index
    %2 = vector.load %arg3[%c0_5, %c0_6, %c0_7, %c0_8] : memref<4x1x128x128xbf16, #tpu.memory_space<vmem>>, vector<1x1x128x128xbf16>
    %3 = vector.shape_cast %2 : vector<1x1x128x128xbf16> to vector<1x128x128xbf16>
    "tpu.trace_start"() <{level = 10 : i32, message = "bnf,bfo->bno"}> : () -> ()
    %cst = arith.constant dense<0.000000e+00> : vector<1x16x128xf32>
    %4 = tpu.matmul %0, %3, %cst {dimension_numbers = #tpu.dot_dimension_numbers<[2], [1], [1], [2], [0, 0, 0, 1, 1, 2], [0], [0]>} : vector<1x16x128xbf16>, vector<1x128x128xbf16>, vector<1x16x128xf32> -> vector<1x16x128xf32>
    "tpu.trace_stop"() : () -> ()
    %5 = arith.truncf %4 : vector<1x16x128xf32> to vector<1x16x128xbf16>
    "tpu.trace_start"() <{level = 10 : i32, message = "bnm,bmo->bno"}> : () -> ()
    %cst_9 = arith.constant dense<0.000000e+00> : vector<1x16x128xf32>
    %6 = tpu.matmul %1, %5, %cst_9 {dimension_numbers = #tpu.dot_dimension_numbers<[2], [1], [1], [2], [0, 0, 0, 1, 1, 2], [0], [0]>} : vector<1x16x16xbf16>, vector<1x16x128xbf16>, vector<1x16x128xf32> -> vector<1x16x128xf32>
    "tpu.trace_stop"() : () -> ()
    %c0_10 = arith.constant 0 : index
    %c0_11 = arith.constant 0 : index
    %c0_12 = arith.constant 0 : index
    %c0_13 = arith.constant 0 : index
    %7 = vector.load %arg4[%c0_10, %c0_11, %c0_12, %c0_13] : memref<4x1x1x128xf32, #tpu.memory_space<vmem>>, vector<1x1x1x128xf32>
    %8 = vector.shape_cast %7 : vector<1x1x1x128xf32> to vector<1x1x128xf32>
    %9 = vector.broadcast %8 : vector<1x1x128xf32> to vector<1x16x128xf32>
    %10 = arith.addf %6, %9 : vector<1x16x128xf32>
    %cst_14 = arith.constant 0.000000e+00 : f32
    %11 = vector.broadcast %cst_14 : f32 to vector<1x16x128xf32>
    %12 = arith.maximumf %10, %11 : vector<1x16x128xf32>
    %13 = arith.truncf %12 : vector<1x16x128xf32> to vector<1x16x128xbf16>
    %c1 = arith.constant 1 : index
    %c0_15 = arith.constant 0 : index
    %c0_16 = arith.constant 0 : index
    %c0_17 = arith.constant 0 : index
    %14 = vector.load %arg3[%c1, %c0_15, %c0_16, %c0_17] : memref<4x1x128x128xbf16, #tpu.memory_space<vmem>>, vector<1x1x128x128xbf16>
    %15 = vector.shape_cast %14 : vector<1x1x128x128xbf16> to vector<1x128x128xbf16>
    "tpu.trace_start"() <{level = 10 : i32, message = "bnf,bfo->bno"}> : () -> ()
    %cst_18 = arith.constant dense<0.000000e+00> : vector<1x16x128xf32>
    %16 = tpu.matmul %13, %15, %cst_18 {dimension_numbers = #tpu.dot_dimension_numbers<[2], [1], [1], [2], [0, 0, 0, 1, 1, 2], [0], [0]>} : vector<1x16x128xbf16>, vector<1x128x128xbf16>, vector<1x16x128xf32> -> vector<1x16x128xf32>
    "tpu.trace_stop"() : () -> ()
    %17 = arith.truncf %16 : vector<1x16x128xf32> to vector<1x16x128xbf16>
    "tpu.trace_start"() <{level = 10 : i32, message = "bnm,bmo->bno"}> : () -> ()
    %cst_19 = arith.constant dense<0.000000e+00> : vector<1x16x128xf32>
    %18 = tpu.matmul %1, %17, %cst_19 {dimension_numbers = #tpu.dot_dimension_numbers<[2], [1], [1], [2], [0, 0, 0, 1, 1, 2], [0], [0]>} : vector<1x16x16xbf16>, vector<1x16x128xbf16>, vector<1x16x128xf32> -> vector<1x16x128xf32>
    "tpu.trace_stop"() : () -> ()
    %c1_20 = arith.constant 1 : index
    %c0_21 = arith.constant 0 : index
    %c0_22 = arith.constant 0 : index
    %c0_23 = arith.constant 0 : index
    %19 = vector.load %arg4[%c1_20, %c0_21, %c0_22, %c0_23] : memref<4x1x1x128xf32, #tpu.memory_space<vmem>>, vector<1x1x1x128xf32>
    %20 = vector.shape_cast %19 : vector<1x1x1x128xf32> to vector<1x1x128xf32>
    %21 = vector.broadcast %20 : vector<1x1x128xf32> to vector<1x16x128xf32>
    %22 = arith.addf %18, %21 : vector<1x16x128xf32>
    %cst_24 = arith.constant 0.000000e+00 : f32
    %23 = vector.broadcast %cst_24 : f32 to vector<1x16x128xf32>
    %24 = arith.maximumf %22, %23 : vector<1x16x128xf32>
    %25 = arith.truncf %24 : vector<1x16x128xf32> to vector<1x16x128xbf16>
    %c2 = arith.constant 2 : index
    %c0_25 = arith.constant 0 : index
    %c0_26 = arith.constant 0 : index
    %c0_27 = arith.constant 0 : index
    %26 = vector.load %arg3[%c2, %c0_25, %c0_26, %c0_27] : memref<4x1x128x128xbf16, #tpu.memory_space<vmem>>, vector<1x1x128x128xbf16>
    %27 = vector.shape_cast %26 : vector<1x1x128x128xbf16> to vector<1x128x128xbf16>
    "tpu.trace_start"() <{level = 10 : i32, message = "bnf,bfo->bno"}> : () -> ()
    %cst_28 = arith.constant dense<0.000000e+00> : vector<1x16x128xf32>
    %28 = tpu.matmul %25, %27, %cst_28 {dimension_numbers = #tpu.dot_dimension_numbers<[2], [1], [1], [2], [0, 0, 0, 1, 1, 2], [0], [0]>} : vector<1x16x128xbf16>, vector<1x128x128xbf16>, vector<1x16x128xf32> -> vector<1x16x128xf32>
    "tpu.trace_stop"() : () -> ()
    %29 = arith.truncf %28 : vector<1x16x128xf32> to vector<1x16x128xbf16>
    "tpu.trace_start"() <{level = 10 : i32, message = "bnm,bmo->bno"}> : () -> ()
    %cst_29 = arith.constant dense<0.000000e+00> : vector<1x16x128xf32>
    %30 = tpu.matmul %1, %29, %cst_29 {dimension_numbers = #tpu.dot_dimension_numbers<[2], [1], [1], [2], [0, 0, 0, 1, 1, 2], [0], [0]>} : vector<1x16x16xbf16>, vector<1x16x128xbf16>, vector<1x16x128xf32> -> vector<1x16x128xf32>
    "tpu.trace_stop"() : () -> ()
    %c2_30 = arith.constant 2 : index
    %c0_31 = arith.constant 0 : index
    %c0_32 = arith.constant 0 : index
    %c0_33 = arith.constant 0 : index
    %31 = vector.load %arg4[%c2_30, %c0_31, %c0_32, %c0_33] : memref<4x1x1x128xf32, #tpu.memory_space<vmem>>, vector<1x1x1x128xf32>
    %32 = vector.shape_cast %31 : vector<1x1x1x128xf32> to vector<1x1x128xf32>
    %33 = vector.broadcast %32 : vector<1x1x128xf32> to vector<1x16x128xf32>
    %34 = arith.addf %30, %33 : vector<1x16x128xf32>
    %cst_34 = arith.constant 0.000000e+00 : f32
    %35 = vector.broadcast %cst_34 : f32 to vector<1x16x128xf32>
    %36 = arith.maximumf %34, %35 : vector<1x16x128xf32>
    %37 = arith.truncf %36 : vector<1x16x128xf32> to vector<1x16x128xbf16>
    %c3 = arith.constant 3 : index
    %c0_35 = arith.constant 0 : index
    %c0_36 = arith.constant 0 : index
    %c0_37 = arith.constant 0 : index
    %38 = vector.load %arg3[%c3, %c0_35, %c0_36, %c0_37] : memref<4x1x128x128xbf16, #tpu.memory_space<vmem>>, vector<1x1x128x128xbf16>
    %39 = vector.shape_cast %38 : vector<1x1x128x128xbf16> to vector<1x128x128xbf16>
    "tpu.trace_start"() <{level = 10 : i32, message = "bnf,bfo->bno"}> : () -> ()
    %cst_38 = arith.constant dense<0.000000e+00> : vector<1x16x128xf32>
    %40 = tpu.matmul %37, %39, %cst_38 {dimension_numbers = #tpu.dot_dimension_numbers<[2], [1], [1], [2], [0, 0, 0, 1, 1, 2], [0], [0]>} : vector<1x16x128xbf16>, vector<1x128x128xbf16>, vector<1x16x128xf32> -> vector<1x16x128xf32>
    "tpu.trace_stop"() : () -> ()
    %41 = arith.truncf %40 : vector<1x16x128xf32> to vector<1x16x128xbf16>
    "tpu.trace_start"() <{level = 10 : i32, message = "bnm,bmo->bno"}> : () -> ()
    %cst_39 = arith.constant dense<0.000000e+00> : vector<1x16x128xf32>
    %42 = tpu.matmul %1, %41, %cst_39 {dimension_numbers = #tpu.dot_dimension_numbers<[2], [1], [1], [2], [0, 0, 0, 1, 1, 2], [0], [0]>} : vector<1x16x16xbf16>, vector<1x16x128xbf16>, vector<1x16x128xf32> -> vector<1x16x128xf32>
    "tpu.trace_stop"() : () -> ()
    %c3_40 = arith.constant 3 : index
    %c0_41 = arith.constant 0 : index
    %c0_42 = arith.constant 0 : index
    %c0_43 = arith.constant 0 : index
    %43 = vector.load %arg4[%c3_40, %c0_41, %c0_42, %c0_43] : memref<4x1x1x128xf32, #tpu.memory_space<vmem>>, vector<1x1x1x128xf32>
    %44 = vector.shape_cast %43 : vector<1x1x1x128xf32> to vector<1x1x128xf32>
    %45 = vector.broadcast %44 : vector<1x1x128xf32> to vector<1x16x128xf32>
    %46 = arith.addf %42, %45 : vector<1x16x128xf32>
    %c0_44 = arith.constant 0 : index
    %c0_45 = arith.constant 0 : index
    %c0_46 = arith.constant 0 : index
    %47 = vector.load %arg5[%c0_44, %c0_45, %c0_46] : memref<1x16x128xf32, #tpu.memory_space<vmem>>, vector<1x16x128xf32>
    tpu.vector_store %arg5[%c0_44, %c0_45, %c0_46], %46 {strides = array<i32>} : memref<1x16x128xf32, #tpu.memory_space<vmem>>, vector<1x16x128xf32>,
    return
  }
  func.func @transform_0(%arg0: i32) -> (i32, i32, i32) {
    %c0_i32 = arith.constant 0 : i32
    %c0_i32_0 = arith.constant 0 : i32
    %c0_i32_1 = arith.constant 0 : i32
    return %arg0, %c0_i32, %c0_i32_0 : i32, i32, i32
  }
  func.func @transform_1(%arg0: i32) -> (i32, i32, i32) {
    %c0_i32 = arith.constant 0 : i32
    %c0_i32_0 = arith.constant 0 : i32
    %c0_i32_1 = arith.constant 0 : i32
    return %arg0, %c0_i32, %c0_i32_0 : i32, i32, i32
  }
  func.func @transform_2(%arg0: i32) -> (i32, i32, i32, i32) {
    %c0_i32 = arith.constant 0 : i32
    %c0_i32_0 = arith.constant 0 : i32
    %c0_i32_1 = arith.constant 0 : i32
    %c0_i32_2 = arith.constant 0 : i32
    return %c0_i32, %arg0, %c0_i32_0, %c0_i32_1 : i32, i32, i32, i32
  }
  func.func @transform_3(%arg0: i32) -> (i32, i32, i32, i32) {
    %c0_i32 = arith.constant 0 : i32
    %c0_i32_0 = arith.constant 0 : i32
    %c0_i32_1 = arith.constant 0 : i32
    %c0_i32_2 = arith.constant 0 : i32
    return %c0_i32, %arg0, %c0_i32_0, %c0_i32_1 : i32, i32, i32, i32
  }
  func.func @transform_4(%arg0: i32) -> (i32, i32, i32) {
    %c0_i32 = arith.constant 0 : i32
    %c0_i32_0 = arith.constant 0 : i32
    %c0_i32_1 = arith.constant 0 : i32
    return %arg0, %c0_i32, %c0_i32_0 : i32, i32, i32
  }
}

</mosaic_0001>

<bundles_post_ra>
// kernel: tpu_custom_call.1
= control target key start
LH: loop header
LB: loop body
LE: loop exit
PB: predicated region body
PF: predicated region fallthrough
CT: control target
= control target key end

     0   :  { %9 = vsyncpa [#allocation3], 0  ;;  %s1762_s0 = inlined_call_operand.hbm [shape: bf16[2,16,128], index: 0, kind: input, shape index: {}]   ;;  %s1763_s1 = inlined_call_operand.hbm [shape: bf16[2,16,16], index: 1, kind: input, shape index: {}]   ;;  %s1764_s2 = inlined_call_operand.hbm [shape: bf16[4,2,128,128], index: 2, kind: input, shape index: {}]   ;;  %s1765_s3 = inlined_call_operand.hbm [shape: f32[4,2,1,128], index: 3, kind: input, shape index: {}]   ;;  %s1766_s4 = inlined_call_operand.hbm [shape: f32[2,16,128], index: 4, kind: output, shape index: {}]  }
   0x1   :  { %11 = vsyncpa [#allocation3 + $0x1], 0 }
   0x2   :  { %12 = vsyncpa [#allocation6], 0 }
   0x3   :  { %14 = vsyncpa [#allocation6 + $0x1], 0 }
   0x4   :  { %15 = vsyncpa [#allocation9], 0 }
   0x5   :  { %17 = vsyncpa [#allocation9 + $0x1], 0 }
   0x6   :  { %18 = vsyncpa [#allocation4], 0 }
   0x7   :  { %20 = vsyncpa [#allocation4 + $0x1], 0  ;;  %s1516_s15 = smov 0   ;;  %s1518_s16 = smov 0  }
   0x8   :  { %s1520_s17 = smov 0   ;;  %s1522_s18 = smov 0  }
   0x9 LB: > { %1771 = sst [smem:[#allocation18_spill]] %s1472_s17  ;;  %s1537_s19 = sadd.s32 4294967295, %s1476_s18   ;;  %s1476_s18 = sphi %s1522_s18, %s1780_s18   ;;  %s1472_s17 = sphi %s1520_s17, %s1782_s17   ;;  %s1468_s16 = sphi %s1518_s16, %s1784_s16   ;;  %s1464_s15 = sphi %s1516_s15, %s1783_s15  }
   0xa   : > { %s992_s20 = sadd.s32 4294967294, %s1476_s18   ;;  %s1541_s21 = sadd.s32 1, %s1476_s18  }
   0xb   : > { %1772 = sst [smem:[#allocation19_spill]] %s1541_s21  ;;  %s33_s22 = sadd.s32 1, %s1472_s17 }
   0xc   : > { %s30_s23 = ssub.s32 %s1476_s18, %s1541_s21  ;;  %p40_p0 = scmp.ne.s32.totalorder %s1472_s17, %s1468_s16 }
   0xd   : > { %p31_p1 = scmp.eq.s32.totalorder %s30_s23, 0  ;;  %p41_p2 = scmp.eq.s32.totalorder %s1476_s18, 0 }
   0xe   : > { %p46_p3 = scmp.ne.s32.totalorder %s1468_s16, %s1464_s15  ;;  %p47_p4 = scmp.eq.s32.totalorder %s1537_s19, 0 }
   0xf   : > { %s1553_s24 = scalar_select %p31_p1, %s1472_s17, %s33_s22  }
  0x10   : > { %p1555_p5 = por %p41_p2, %p40_p0  ;;  %p1559_p6 = por %p47_p4, %p46_p3 }
  0x11   : > { %1773 = sst [smem:[#allocation20_spill]] %s1553_s24  ;;  %p148_p7 = scmp.eq.s32.totalorder %s1537_s19, 1 }
  0x12   : > { %p154_p8 = scmp.eq.s32.totalorder %s992_s20, 1  ;;  %p994_p11 = scmp.ge.s32.totalorder %s1476_s18, 2 }
  0x13   : > { %p1564_p9 = por %p148_p7, %p40_p0  ;;  %s1576_s29 = sand.u32 (!%p994_p11), 1, %s1472_s17  }
  0x14   : > { %p1568_p10 = por %p154_p8, %p46_p3  ;;  %170 = sbr.rel (%p994_p11) target bundleno = 83 (0x53), region = 16 }
  0x15   : > { %s1209_s30 = sshll.u32 (!%p994_p11), %s1476_s18, 3  ;;  %s995_s5 = sshll.u32 (!%p994_p11), %s1576_s29, 3 }
  0x16   : > { %s1777_s28 = scalar_select %p1568_p10, 1, 0 }
  0x17   : > { %s183_s8 = scalar_lea.hbm (!%p994_p11), %s1762_s0, %s1209_s30  ;;  %s178_s10 = scalar_lea.vmem (!%p994_p11), [#allocation2], %s995_s5 }
  0x18   : > { %1778 = sst [smem:[#allocation21_spill]] %s1777_s28  ;;  %s184_s9 = sshll.u32 (!%p994_p11), %s183_s8, 4  ;;  %s185_s9 = int_to_ptr.hbm [resolvable:$true] %s184_s9 }
  0x19   : > { %s186_s11 = sshll.u32 %s178_s10, 4  ;;  %s175_s12 = scalar_lea.sflag [#allocation3], %s1576_s29  ;;  %s187_s11 = int_to_ptr.vmem [resolvable:$true] %s186_s11 }
  0x1a   : > { %s1318_s13 = sshra.s32 %s185_s9, 4  ;;  %s1324_s23 = scalar_lea.hbm %s1762_s0, 16  ;;  %s1319_s13 = int_to_ptr.hbm [resolvable:$true] %s1318_s13 }
  0x1b   : > { %s1320_s14 = scalar_lea.hbm %s1319_s13, 8  ;;  %p1325_p1 = scmp.lt.s32.totalorder %s1319_s13, %s1762_s0 }
  0x1c   : > { %p1321_p12 = scmp.ne.s32.totalorder %s1319_s13, %s1320_s14  ;;  %p1326_p2 = scmp.lt.s32.totalorder %s1324_s23, %s1320_s14 }
  0x1e   : > { %p1322_p13 = pnand %p1321_p12, %p1555_p5  ;;  %p1327_p3 = por %p1326_p2, %p1325_p1 }
  0x20   : > { %p1323_p0 = pneg %p1322_p13 }
  0x22   : > { %p1328_p4 = pnand %p1327_p3, %p1323_p0 }
  0x24   : > { %1331 = shalt.err (!%p1328_p4)
}
  0x25   : > { %s1478_s7 = smov 64   ;;  %s1479_s8 = smov 4  }
  0x26   : > { %1247 = dma.hbm_to_vmem [thread:$0]  (%p1555_p5), %s185_s9, 128, %s187_s11, %s175_s12, %s1478_s7, %s1478_s7, %s1479_s8  }
  0x27   : > { %s196_s10 = sand.u32 1, %s1476_s18   ;;  %s205_s20 = scalar_lea.hbm %s1763_s1, %s1209_s30 }
  0x28   : > { %s206_s22 = sshll.u32 %s205_s20, 4  ;;  %s200_s28 = scalar_lea.vmem [#allocation5], %s995_s5  ;;  %s207_s22 = int_to_ptr.hbm [resolvable:$true] %s206_s22 }
  0x29   : > { %s208_s24 = sshll.u32 %s200_s28, 4  ;;  %s1598_s13 = scalar_lea.sflag [#allocation6], %s196_s10  ;;  %s209_s24 = int_to_ptr.vmem [resolvable:$true] %s208_s24 }
  0x2a   : > { %s1346_s14 = sshra.s32 %s207_s22, 4  ;;  %s1352_s12 = scalar_lea.hbm %s1763_s1, 16  ;;  %s1347_s14 = int_to_ptr.hbm [resolvable:$true] %s1346_s14 }
  0x2b   : > { %s1348_s23 = scalar_lea.hbm %s1347_s14, 8  ;;  %p1353_p13 = scmp.lt.s32.totalorder %s1347_s14, %s1763_s1 }
  0x2c   : > { %p1349_p7 = scmp.ne.s32.totalorder %s1347_s14, %s1348_s23  ;;  %p1354_p0 = scmp.lt.s32.totalorder %s1352_s12, %s1348_s23 }
  0x2e   : > { %p1350_p8 = pnand %p1349_p7, %p1555_p5  ;;  %p1355_p1 = por %p1354_p0, %p1353_p13 }
  0x30   : > { %p1351_p12 = pneg %p1350_p8 }
  0x32   : > { %p1356_p2 = pnand %p1355_p1, %p1351_p12 }
  0x34   : > { %1359 = shalt.err (!%p1356_p2)
}
  0x35   : > { %1248 = dma.hbm_to_vmem [thread:$0]  (%p1555_p5), %s207_s22, 128, %s209_s24, %s1598_s13, %s1478_s7, %s1478_s7, %s1479_s8  }
  0x36   : > { %s1001_s28 = sshll.u32 %s1576_s29, 8  ;;  %s1211_s30 = sshll.u32 %s1476_s18, 6 }
  0x37   : > { %s227_s10 = scalar_lea.hbm %s1764_s2, %s1211_s30  ;;  %s222_s23 = scalar_lea.vmem [#allocation7], %s1001_s28 }
  0x38   : > { %s1249_s20 = scalar_select %p1555_p5, [#allocation0], [#allocation13] }
  0x39   : > { %s240_s14 = sshll.u32 %s227_s10, 4  ;;  %s242_s9 = sshll.u32 %s222_s23, 4  ;;  %s241_s14 = int_to_ptr.hbm [resolvable:$true] %s240_s14  ;;  %s243_s9 = int_to_ptr.vmem [resolvable:$true] %s242_s9 }
  0x3a   : > { %s232_s7 = sld [smem:[%s1249_s20]]   ;;  %s1480_s8 = smov 2048  }
  0x3b   : > { %1250 = sst [smem:[#allocation12]] (%p1555_p5), %s1480_s8  ;;  %s1481_s22 = smov 1024  }
  0x3c   : > { %1251 = sst [smem:[#allocation12 + $0x1]] (%p1555_p5), %s1481_s22  ;;  %s1482_s24 = smov 16  }
  0x3d   : > { %1252 = sst [smem:[#allocation12 + $0x2]] (%p1555_p5), %s1482_s24  ;;  %s1483_s11 = smov 64  }
  0x3e   : > { %1253 = sst [smem:[#allocation12 + $0x3]] (%p1555_p5), %s1483_s11  ;;  %s1484_s21 = smov 4  }
  0x3f   : > { %1254 = sst [smem:[#allocation12 + $0x4]] (%p1555_p5), %s1483_s11  ;;  %s1485_s28 = smov [#allocation11]  }
  0x40   : > { %s1004_s12 = sshll.u32 %s232_s7, 26  ;;  %1255 = sst [smem:[#allocation12 + $0x5]] (%p1555_p5), %s1484_s21 }
  0x41   : > { %s1005_s17 = sadd.s32 134217728, %s1004_s12  ;;  %s1006_s30 = sshll.u32 %s1576_s29, 2 }
  0x42   : > { %1256 = dma.general (%p1555_p5), %s241_s14, 4096, %s243_s9, %s1598_s13, %s1485_s28, [#allocation12], %s1005_s17, 0  }
  0x43   : > { %s272_s10 = scalar_lea.hbm %s1765_s3, %s1476_s18  ;;  %s269_s23 = scalar_lea.vmem [#allocation8], %s1006_s30 }
  0x44   : > { %s273_s20 = sshll.u32 %s272_s10, 4  ;;  %s275_s7 = sshll.u32 %s269_s23, 4  ;;  %s274_s20 = int_to_ptr.hbm [resolvable:$true] %s273_s20  ;;  %s276_s7 = int_to_ptr.vmem [resolvable:$true] %s275_s7 }
  0x45   : > { %s266_s8 = scalar_lea.sflag [#allocation9], %s1576_s29  ;;  %s1374_s22 = sshra.s32 %s274_s20, 4  ;;  %s1375_s22 = int_to_ptr.hbm [resolvable:$true] %s1374_s22 }
  0x46   : > { %s1376_s24 = scalar_lea.hbm %s1375_s22, 4  ;;  %s1380_s9 = scalar_lea.hbm %s1765_s3, 8 }
  0x47   : > { %p1377_p3 = scmp.ne.s32.totalorder %s1375_s22, %s1376_s24  ;;  %p1381_p8 = scmp.lt.s32.totalorder %s1375_s22, %s1765_s3 }
  0x48   : > { %p1382_p12 = scmp.lt.s32.totalorder %s1380_s9, %s1376_s24 }
  0x49   : > { %p1378_p4 = pnand %p1377_p3, %p1555_p5 }
  0x4a   : > { %p1383_p13 = por %p1382_p12, %p1381_p8 }
  0x4b   : > { %p1379_p7 = pneg %p1378_p4 }
  0x4d   : > { %p1384_p0 = pnand %p1383_p13, %p1379_p7 }
  0x4f   : > { %1387 = shalt.err (!%p1384_p0)
}
  0x50   : > { %s1486_s29 = smov 32   ;;  %s1487_s17 = smov 16  }
  0x51   : > { %s1488_s21 = smov 1  }
  0x52   : > { %1257 = dma.hbm_to_vmem [thread:$0]  (%p1555_p5), %s274_s20, 64, %s276_s7, %s266_s8, %s1486_s29, %s1487_s17, %s1488_s21  }
  0x53 PF: > { %p1007_p1 = scmp.ge.s32.totalorder %s1476_s18, 1  ;;  %p283_p2 = scmp.lt.s32.totalorder %s1476_s18, 3 }
  0x55   : > { %p284_p3 = pnand %p1007_p1, %p283_p2 }
  0x56   : > { %s1652_s28 = sand.u32 (!%p284_p3), 1, %s1468_s16  }
  0x57   : > { %287 = sbr.rel (%p284_p3) target bundleno = 1300 (0x514), region = 36  ;;  %s1008_s30 = sshll.u32 (!%p284_p3), %s1652_s28, 3 }
  0x58   : > { %s290_s5 = scalar_lea.sflag (!%p284_p3), [#allocation3], %s1652_s28  ;;  %s1656_s6 = scalar_lea.vmem (!%p284_p3), [#allocation2], %s1008_s30 }
  0x5c   : > { %1447 = dma.done.wait (%p1559_p6), %s290_s5, 128  }
  0x5d   : > { %1449 = vsyncadd (%p1559_p6), %s290_s5, 4294967168  ;;  %s299_s25 = sand.u32 1, %s1537_s19   ;;  %s1663_s20 = scalar_lea.vmem [#allocation5], %s1008_s30 }
  0x5e   : > { %s300_s10 = scalar_lea.sflag [#allocation6], %s299_s25 }
  0x5f   : > { %1451 = dma.done.wait (%p1559_p6), %s300_s10, 4224  }
  0x60   : > { %1453 = vsyncadd (%p1559_p6), %s300_s10, 4294963072  ;;  %s1010_s23 = sshll.u32 %s1652_s28, 8  ;;  %s1011_s7 = sshll.u32 %s1652_s28, 2 }
  0x61   : > { %s1671_s8 = scalar_lea.vmem [#allocation7], %s1010_s23  ;;  %s320_s22 = scalar_lea.sflag [#allocation9], %s1652_s28 }
  0x62   : > { %s1674_s24 = scalar_lea.vmem [#allocation8], %s1011_s7 }
  0x63   : > { %1455 = dma.done.wait (%p1559_p6), %s320_s22, 64  }
  0x64   : > { %1457 = vsyncadd (%p1559_p6), %s320_s22, 4294967232  ;;  %v1221_v0 = vld [vmem:[%s1671_s8 + $0x38] sm:$0xff]  ;;  %v1220_v1 = vld [vmem:[%s1671_s8 + $0x30] sm:$0xff]  ;;  %vm470_vm0 = vcmask 130048   ;;  %s1012_s26 = sshll.u32 %s1652_s28, 4  ;;  %s1246_s13 = sshll.u32 %s1537_s19, 4 }
  0x65   : > { %439 = vmatpush.bf16.msra.mxu0 %v1221_v0  ;;  %v1219_v2 = vld [vmem:[%s1671_s8 + $0x28] sm:$0xff]  ;;  %v1218_v3 = vld [vmem:[%s1671_s8 + $0x20] sm:$0xff]  ;;  %v1217_v4 = vld [vmem:[%s1671_s8 + $0x18] sm:$0xff]  ;;  %s850_s11 = scalar_lea.hbm %s1766_s4, %s1246_s13  ;;  %s363_s12 = scalar_lea.vmem [#allocation10], %s1012_s26 }
  0x66   : > { %v1216_v5 = vld [vmem:[%s1671_s8 + $0x10] sm:$0xff]  ;;  %v1215_v6 = vld [vmem:[%s1671_s8 + $0x8] sm:$0xff]  ;;  %v1214_v7 = vld [vmem:[%s1671_s8] sm:$0xff]  ;;  %s851_s29 = sshll.u32 %s363_s12, 4  ;;  %s853_s17 = sshll.u32 %s850_s11, 4  ;;  %s852_s29 = int_to_ptr.vmem [resolvable:$true] %s851_s29  ;;  %s854_s17 = int_to_ptr.hbm [resolvable:$true] %s853_s17 }
  0x67   : > { %v1212_v8 = vld [vmem:[%s1656_s6] sm:$0xff]  ;;  %v1229_v9 = vld [vmem:[%s1671_s8 + $0x78] sm:$0xff]  ;;  %v1228_v10 = vld [vmem:[%s1671_s8 + $0x70] sm:$0xff]  ;;  %s839_s21 = scalar_lea.sflag [#allocation4], %s1652_s28  ;;  %s1416_s30 = sshra.s32 %s854_s17, 4  ;;  %s1417_s30 = int_to_ptr.hbm [resolvable:$true] %s1416_s30 }
  0x68   : > { %563 = vmatpush.bf16.msra.mxu2 %v1229_v9  ;;  %v1227_v11 = vld [vmem:[%s1671_s8 + $0x68] sm:$0xff]  ;;  %v1693_v19 = vld [vmem:[%s1663_s20] sm:$0xff]  ;;  %v1226_v20 = vld [vmem:[%s1671_s8 + $0x60] sm:$0xff]  ;;  %s1418_s19 = scalar_lea.hbm %s1417_s30, 16  ;;  %s1422_s25 = scalar_lea.hbm %s1766_s4, 32 }
  0x69   : > { %440 = vmatpush.bf16.msra.mxu0 %v1220_v1  ;;  %v1225_v21 = vld [vmem:[%s1671_s8 + $0x58] sm:$0xff]  ;;  %v1224_v22 = vld [vmem:[%s1671_s8 + $0x50] sm:$0xff]  ;;  %v1223_v23 = vld [vmem:[%s1671_s8 + $0x48] sm:$0xff]  ;;  %p1419_p5 = scmp.ne.s32.totalorder %s1417_s30, %s1418_s19  ;;  %p1423_p7 = scmp.lt.s32.totalorder %s1417_s30, %s1766_s4 }
  0x6a   : > { %v1222_v24 = vld [vmem:[%s1671_s8 + $0x40] sm:$0xff]  ;;  %v1237_v37 = vld [vmem:[%s1671_s8 + $0xb8] sm:$0xff]  ;;  %v1236_v38 = vld [vmem:[%s1671_s8 + $0xb0] sm:$0xff]  ;;  %p1424_p8 = scmp.lt.s32.totalorder %s1422_s25, %s1418_s19 }
  0x6b   : > { %v1314_v25 = vld [vmem:[%s1674_s24] ss:$0 sm:$0xff]  ;;  %v1235_v39 = vld [vmem:[%s1671_s8 + $0xa8] sm:$0xff]  ;;  %v1233_v48 = vld [vmem:[%s1671_s8 + $0x98] sm:$0xff]  ;;  %p1420_p6 = pnand %p1419_p5, %p1564_p9 }
  0x6c   : > { %564 = vmatpush.bf16.msra.mxu2 %v1228_v10  ;;  %v1234_v47 = vld [vmem:[%s1671_s8 + $0xa0] sm:$0xff]  ;;  %v1232_v49 = vld [vmem:[%s1671_s8 + $0x90] sm:$0xff]  ;;  %v1231_v50 = vld [vmem:[%s1671_s8 + $0x88] sm:$0xff]  ;;  %p1425_p12 = por %p1424_p8, %p1423_p7 }
  0x6d   : > { %441 = vmatpush.bf16.msra.mxu0 %v1219_v2  ;;  %v1230_v51 = vld [vmem:[%s1671_s8 + $0x80] sm:$0xff]  ;;  %v1243_v9 = vld [vmem:[%s1671_s8 + $0xe8] sm:$0xff]  ;;  %p1421_p4 = pneg %p1420_p6 }
  0x6e   : > { %v1315_v52 = vld [vmem:[%s1674_s24 + $0x1] ss:$0 sm:$0xff] }
  0x6f   : > { %v1242_v10 = vld [vmem:[%s1671_s8 + $0xe0] sm:$0xff]  ;;  %p1426_p13 = pnand %p1425_p12, %p1421_p4 }
  0x70   : > { %565 = vmatpush.bf16.msra.mxu2 %v1227_v11  ;;  %v1241_v11 = vld [vmem:[%s1671_s8 + $0xd8] sm:$0xff] }
  0x71   : > { %442 = vmatpush.bf16.msra.mxu0 %v1218_v3 }
  0x74   : > { %566 = vmatpush.bf16.msra.mxu2 %v1226_v20 }
  0x75   : > { %443 = vmatpush.bf16.msra.mxu0 %v1217_v4 }
  0x78   : > { %567 = vmatpush.bf16.msra.mxu2 %v1225_v21 }
  0x79   : > { %444 = vmatpush.bf16.msra.mxu0 %v1216_v5 }
  0x7c   : > { %568 = vmatpush.bf16.msra.mxu2 %v1224_v22 }
  0x7d   : > { %445 = vmatpush.bf16.msra.mxu0 %v1215_v6  ;;  %v1245_v6 = vld [vmem:[%s1671_s8 + $0xf8] sm:$0xff] }
  0x80   : > { %569 = vmatpush.bf16.msra.mxu2 %v1223_v23 }
  0x81   : > { %446 = vmatpush.bf16.msra.mxu0 %v1214_v7 }
  0x84   : > { %447 = vmatmul.bf16.vlgmr.msra.gmra.mxu0 %v1212_v8  ;;  %570 = vmatpush.bf16.msra.mxu2 %v1222_v24  ;;  %v1244_v8 = vld [vmem:[%s1671_s8 + $0xf0] sm:$0xff] }
 0x101   : > { %v448_v12 = vpop.f32.mrf.mxu0 }
 0x102   : > { %v453_v13 = vpack.c.bf16 %v448_v12, %v448_v12  ;;  %v1240_v12 = vld [vmem:[%s1671_s8 + $0xd0] sm:$0xff] }
 0x104   : > { %v466_v16 = vunpack.c.l.b16 %v453_v13  ;;  %v1239_v13 = vld [vmem:[%s1671_s8 + $0xc8] sm:$0xff] }
 0x109   : > { %v450_v14 = vpop.f32.mrf.mxu0 }
 0x10a   : > { %v454_v15 = vpack.c.bf16 %v450_v14, %v450_v14  ;;  %v1238_v14 = vld [vmem:[%s1671_s8 + $0xc0] sm:$0xff] }
 0x10c   : > { %v467_v17 = vunpack.c.l.b16 %v454_v15  ;;  %v1316_v15 = vld [vmem:[%s1674_s24 + $0x2] ss:$0 sm:$0xff] }
 0x10e   : > { %v468_v18 = vpack.c.b16 %v467_v17, %v466_v16 }
 0x110   : > { %481 = vmatpush.bf16.msra.mxu1 %v468_v18 }
 0x113   : > { %1053 = vmatmul.msk.bf16.vlgmr.msra.gmra.mxu1 %vm470_vm0, %v1693_v19 }
 0x114   : > { %679 = vmatpush.bf16.msrb.mxu1 %v1237_v37 }
 0x118   : > { %680 = vmatpush.bf16.msrb.mxu1 %v1236_v38 }
 0x11c   : > { %681 = vmatpush.bf16.msrb.mxu1 %v1235_v39 }
 0x120   : > { %682 = vmatpush.bf16.msrb.mxu1 %v1234_v47 }
 0x124   : > { %683 = vmatpush.bf16.msrb.mxu1 %v1233_v48 }
 0x128   : > { %684 = vmatpush.bf16.msrb.mxu1 %v1232_v49 }
 0x12c   : > { %685 = vmatpush.bf16.msrb.mxu1 %v1231_v50 }
 0x130   : > { %686 = vmatpush.bf16.msrb.mxu1 %v1230_v51 }
 0x190   : > { %v483_v26 = vpop.f32.mrf.mxu1 }
 0x191   : > { %v484_v27 = vadd.f32 %v1314_v25, %v483_v26 }
 0x193   : > { %v488_v28 = vmax.f32 %v484_v27, 0.0 }
 0x195   : > { %v490_v31 = vpack.c.bf16 %v488_v28, %v488_v28 }
 0x197   : > { %v511_v34 = vunpack.c.l.b16 %v490_v31 }
 0x198   : > { %v485_v29 = vpop.f32.mrf.mxu1 }
 0x199   : > { %v486_v30 = vadd.f32 %v1314_v25, %v485_v29 }
 0x19b   : > { %v489_v32 = vmax.f32 %v486_v30, 0.0 }
 0x19d   : > { %v491_v33 = vpack.c.bf16 %v489_v32, %v489_v32 }
 0x19f   : > { %v512_v35 = vunpack.c.l.b16 %v491_v33 }
 0x1a1   : > { %v513_v36 = vpack.c.b16 %v512_v35, %v511_v34  ;;  %v1317_v35 = vld [vmem:[%s1674_s24 + $0x3] ss:$0 sm:$0xff] }
 0x1a3   : > { %571 = vmatmul.bf16.vlgmr.msra.gmra.mxu2 %v513_v36 }
 0x226   : > { %v572_v40 = vpop.f32.mrf.mxu2 }
 0x227   : > { %v577_v41 = vpack.c.bf16 %v572_v40, %v572_v40 }
 0x229   : > { %v586_v44 = vunpack.c.l.b16 %v577_v41 }
 0x22e   : > { %v574_v42 = vpop.f32.mrf.mxu2 }
 0x22f   : > { %v578_v43 = vpack.c.bf16 %v574_v42, %v574_v42 }
 0x231   : > { %v587_v45 = vunpack.c.l.b16 %v578_v43 }
 0x233   : > { %v588_v46 = vpack.c.b16 %v587_v45, %v586_v44 }
 0x235   : > { %597 = vmatpush.bf16.msrb.mxu2 %v588_v46 }
 0x238   : > { %1103 = vmatmul.msk.bf16.vlgmr.msrb.gmra.mxu2 %vm470_vm0, %v1693_v19 }
 0x2bb   : > { %v599_v53 = vpop.f32.mrf.mxu2 }
 0x2bc   : > { %v600_v54 = vadd.f32 %v1315_v52, %v599_v53 }
 0x2be   : > { %v604_v55 = vmax.f32 %v600_v54, 0.0 }
 0x2c0   : > { %v606_v58 = vpack.c.bf16 %v604_v55, %v604_v55 }
 0x2c2   : > { %v627_v61 = vunpack.c.l.b16 %v606_v58 }
 0x2c3   : > { %v601_v56 = vpop.f32.mrf.mxu2 }
 0x2c4   : > { %v602_v57 = vadd.f32 %v1315_v52, %v601_v56 }
 0x2c6   : > { %v605_v59 = vmax.f32 %v602_v57, 0.0 }
 0x2c8   : > { %v607_v60 = vpack.c.bf16 %v605_v59, %v605_v59 }
 0x2ca   : > { %v628_v62 = vunpack.c.l.b16 %v607_v60 }
 0x2cc   : > { %v629_v63 = vpack.c.b16 %v628_v62, %v627_v61 }
 0x2ce   : > { %687 = vmatmul.bf16.vlgmr.msrb.gmra.mxu1 %v629_v63 }
 0x34b   : > { %v688_v0 = vpop.f32.mrf.mxu1 }
 0x34c   : > { %v693_v1 = vpack.c.bf16 %v688_v0, %v688_v0 }
 0x34e   : > { %v702_v4 = vunpack.c.l.b16 %v693_v1 }
 0x353   : > { %v690_v2 = vpop.f32.mrf.mxu1 }
 0x354   : > { %v694_v3 = vpack.c.bf16 %v690_v2, %v690_v2 }
 0x356   : > { %v703_v5 = vunpack.c.l.b16 %v694_v3 }
 0x358   : > { %v704_v7 = vpack.c.b16 %v703_v5, %v702_v4 }
 0x35a   : > { %713 = vmatpush.bf16.msra.mxu3 %v704_v7 }
 0x35d   : > { %1153 = vmatmul.msk.bf16.vlgmr.msra.gmra.mxu3 %vm470_vm0, %v1693_v19 }
 0x35e   : > { %795 = vmatpush.bf16.msrb.mxu3 %v1245_v6 }
 0x362   : > { %796 = vmatpush.bf16.msrb.mxu3 %v1244_v8 }
 0x366   : > { %797 = vmatpush.bf16.msrb.mxu3 %v1243_v9 }
 0x36a   : > { %798 = vmatpush.bf16.msrb.mxu3 %v1242_v10 }
 0x36e   : > { %799 = vmatpush.bf16.msrb.mxu3 %v1241_v11 }
 0x372   : > { %800 = vmatpush.bf16.msrb.mxu3 %v1240_v12 }
 0x376   : > { %801 = vmatpush.bf16.msrb.mxu3 %v1239_v13 }
 0x37a   : > { %802 = vmatpush.bf16.msrb.mxu3 %v1238_v14 }
 0x3e0   : > { %v715_v16 = vpop.f32.mrf.mxu3 }
 0x3e1   : > { %v716_v17 = vadd.f32 %v1316_v15, %v715_v16 }
 0x3e3   : > { %v720_v18 = vmax.f32 %v716_v17, 0.0 }
 0x3e5   : > { %v722_v22 = vpack.c.bf16 %v720_v18, %v720_v18 }
 0x3e7   : > { %v743_v25 = vunpack.c.l.b16 %v722_v22 }
 0x3e8   : > { %v717_v20 = vpop.f32.mrf.mxu3 }
 0x3e9   : > { %v718_v21 = vadd.f32 %v1316_v15, %v717_v20 }
 0x3eb   : > { %v721_v23 = vmax.f32 %v718_v21, 0.0 }
 0x3ed   : > { %v723_v24 = vpack.c.bf16 %v721_v23, %v721_v23 }
 0x3ef   : > { %v744_v26 = vunpack.c.l.b16 %v723_v24 }
 0x3f1   : > { %v745_v27 = vpack.c.b16 %v744_v26, %v743_v25 }
 0x3f3   : > { %803 = vmatmul.bf16.vlgmr.msrb.gmra.mxu3 %v745_v27 }
 0x476   : > { %v804_v28 = vpop.f32.mrf.mxu3 }
 0x477   : > { %v809_v29 = vpack.c.bf16 %v804_v28, %v804_v28 }
 0x479   : > { %v818_v32 = vunpack.c.l.b16 %v809_v29 }
 0x47e   : > { %v806_v30 = vpop.f32.mrf.mxu3 }
 0x47f   : > { %v810_v31 = vpack.c.bf16 %v806_v30, %v806_v30 }
 0x481   : > { %v819_v33 = vunpack.c.l.b16 %v810_v31 }
 0x483   : > { %v820_v34 = vpack.c.b16 %v819_v33, %v818_v32 }
 0x485   : > { %829 = vmatpush.bf16.msrb.mxu0 %v820_v34 }
 0x488   : > { %1203 = vmatmul.msk.bf16.vlgmr.msrb.gmra.mxu0 %vm470_vm0, %v1693_v19 }
 0x505   : > { %v831_v36 = vpop.f32.mrf.mxu0 }
 0x506   : > { %v832_v37 = vadd.f32 %v1317_v35, %v831_v36 }
 0x508   : > { %836 = vst [vmem:[%s363_s12] sm:$0xff] %v832_v37 }
 0x50d   : > { %v833_v38 = vpop.f32.mrf.mxu0 }
 0x50e   : > { %v834_v39 = vadd.f32 %v1317_v35, %v833_v38 }
 0x510   : > { %837 = vst [vmem:[%s363_s12 + $0x8] sm:$0xff] %v834_v39 }
 0x511   : > { %1429 = shalt.err (!%p1426_p13)
}
 0x512   : > { %s1489_s28 = smov 128   ;;  %s1490_s23 = smov 8  }
 0x513   : > { %1262 = dma.vmem_to_hbm [thread:$0]  (%p1564_p9), %s852_s29, 256, %s854_s17, %s839_s21, %s1489_s28, %s1489_s28, %s1490_s23  }
 0x514 PF: > { %s868_s8 = sand.u32 1, %s1464_s15   ;;  %p1265_p0 = pnand %p994_p11, %p1568_p10 }
 0x515   : > { %s869_s22 = scalar_lea.sflag [#allocation4], %s868_s8 }
 0x516   : > { %p1266_p1 = pneg %p1265_p0 }
 0x518   : > { %1459 = dma.done.wait (%p1266_p1), %s869_s22, 256  }
 0x519   : > { %1461 = vsyncadd (%p1266_p1), %s869_s22, 4294967040  ;;  %s1780_s18 = sld [smem:[#allocation19_spill]]  ;;  %s1783_s15 = smov %s1468_s16 }
 0x51a   : > { %s1781_s24 = sld [smem:[#allocation18_spill]] }
 0x51b   : > { %s1782_s17 = sld [smem:[#allocation20_spill]] }
 0x51f   : > { %p23_p2 = scmp.ge.s32.totalorder %s1780_s18, 4  }
 0x520   : > { %s1784_s16 = smov %s1781_s24 }
 0x521   :  { %25 = sbr.rel (!%p23_p2) target bundleno = 9 (0x9), region = 129 }
 0x526   :  { %875 = vsyncpa [#allocation3], 1 }
 0x527   :  { %877 = vsyncpa [#allocation3 + $0x1], 1 }
 0x528   :  { %878 = vsyncpa [#allocation6], 1 }
 0x529   :  { %880 = vsyncpa [#allocation6 + $0x1], 1 }
 0x52a   :  { %881 = vsyncpa [#allocation9], 1 }
 0x52b   :  { %883 = vsyncpa [#allocation9 + $0x1], 1 }
 0x52c   :  { %884 = vsyncpa [#allocation4], 1 }
 0x52d   :  { %886 = vsyncpa [#allocation4 + $0x1], 1 }

</bundles_post_ra>
